<compile_context>
chip_gen: v6e
topology: v6e:2x2x1
jax: 0.10.0
libtpu: 0.0.40
codegen_flags: <defaults>
</compile_context>

<pallas_src>
import math

import jax
import jax.numpy as jnp
from jax.experimental import pallas as pl
from jax.experimental.pallas import tpu as pltpu


# --------------------------------------------------------------------------- #
# Kernel
# --------------------------------------------------------------------------- #
def _adaptive_layer_kernel(x_ref, w1_ref, b1_ref, w2_ref, b2_ref,
                           y1_ref, y2_ref, act_ref):
    # SiLU(x) computed once per row-block (j == 0) into a VMEM scratch, reused
    # for every output-column block j.  f32 math -> exp/logistic on the EUP.
    @pl.when(pl.program_id(1) == 0)
    def _():
        xf = x_ref[...].astype(jnp.float32)
        act_ref[...] = (xf * jax.nn.sigmoid(xf)).astype(act_ref.dtype)

    a = act_ref[...]
    # Two (TM, H) @ (H, TN) MXU matmuls (one per head), f32 accumulation.
    y1 = jnp.dot(a, w1_ref[...], preferred_element_type=jnp.float32)
    y2 = jnp.dot(a, w2_ref[...], preferred_element_type=jnp.float32)
    y1_ref[...] = (y1 + b1_ref[...].astype(jnp.float32)).astype(y1_ref.dtype)
    y2_ref[...] = (y2 + b2_ref[...].astype(jnp.float32)).astype(y2_ref.dtype)


# --------------------------------------------------------------------------- #
# Parameter prep (one-time, outside the hot path)
# --------------------------------------------------------------------------- #
def prepare_params(w1, b1, w2, b2, dtype=None):
    """Transpose torch-layout (out, in) weights to (in, out) and reshape the
    biases to (1, H).  Pass dtype=jnp.bfloat16 to run the MXU natively."""
    if dtype is None:
        dtype = w1.dtype
    H = w1.shape[0]
    w1t = jnp.transpose(w1).astype(dtype)
    w2t = jnp.transpose(w2).astype(dtype)
    b1r = b1.reshape(1, H).astype(dtype)
    b2r = b2.reshape(1, H).astype(dtype)
    return w1t, b1r, w2t, b2r


# --------------------------------------------------------------------------- #
# Tiling / VMEM helpers
# --------------------------------------------------------------------------- #
def _round_up(v, m):
    return ((v + m - 1) // m) * m


def _choose_tm(M, max_tm=512):
    """Row-tile: multiple of 8, <= max_tm, aiming for >= ~8 grid steps (and
    >= 2 so both v7x TensorCores get work)."""
    if M <= 8:
        return M
    return max(8, min(max_tm, _round_up(pl.cdiv(M, 8), 8)))


def _choose_tn(H):
    """Column-tile per head: full H when small / not lane-aligned, otherwise a
    multiple of 128 (MXU-friendly on v5e; multiple of 256 when possible)."""
    if H % 128 != 0 or H <= 1024:
        return H
    for cand in (512, 256, 128):
        if H % cand == 0:
            return cand
    return H


def _vmem_capacity_bytes():
    try:
        info = pltpu.get_tpu_info()
        cap = getattr(info, "vmem_capacity_bytes", None)
        if cap:
            return int(cap)
    except Exception:
        pass
    return 64 << 20  # conservative fallback: v7x per-TensorCore VMEM


# --------------------------------------------------------------------------- #
# Forward wrapper
# --------------------------------------------------------------------------- #
def adaptive_layer_forward(x, w1t, b1r, w2t, b2r):
    """x: (..., H); params from prepare_params.  Returns (y1, y2), each with
    x's shape and x's dtype (documented dtype contract)."""
    orig_shape = x.shape
    H = orig_shape[-1]
    M = int(math.prod(orig_shape[:-1]))
    x2 = x.reshape(M, H)
    out_dt = x.dtype

    TM = _choose_tm(M)
    TN = _choose_tn(H)
    n_i = pl.cdiv(M, TM)
    n_j = pl.cdiv(H, TN)

    x_size = jnp.dtype(x.dtype).itemsize
    w_size = jnp.dtype(w1t.dtype).itemsize
    out_size = jnp.dtype(out_dt).itemsize

    # --- VMEM accounting (includes f32 intermediates + double buffering) ----
    vmem_needed = (
        TM * H * w_size               # SiLU activation scratch (resident)
        + 2 * TM * H * x_size         # x tile, double-buffered
        + 2 * 2 * H * TN * w_size     # w1/w2 tiles, double-buffered
        + 2 * 2 * TN * w_size         # b1/b2 tiles, double-buffered
        + 2 * 2 * TM * TN * out_size  # y1/y2 tiles, double-buffered
        + TM * H * 4                  # f32 copy of x inside SiLU
        + 2 * TM * TN * 4             # f32 matmul results before downcast
        + (2 << 20)                   # Mosaic internal scratch / slack
    )
    vmem_cap = _vmem_capacity_bytes()
    vmem_limit = int(min(int(vmem_cap * 0.85), max(32 << 20, vmem_needed)))

    # --- Advisory cost estimate ---------------------------------------------
    weight_reads = (n_i if n_j > 1 else 1)  # weights re-streamed per row block
    cost = pl.CostEstimate(
        flops=2 * M * H * (2 * H),
        transcendentals=M * H,
        bytes_accessed=int(
            M * H * x_size
            + weight_reads * 2 * H * H * w_size
            + 2 * H * w_size
            + 2 * M * H * out_size),
    )

    y1, y2 = pl.pallas_call(
        _adaptive_layer_kernel,
        grid=(n_i, n_j),
        in_specs=[
            pl.BlockSpec((TM, H), lambda i, j: (i, 0)),   # x: pipelined over M,
                                                          # reused across j
            pl.BlockSpec((H, TN), lambda i, j: (0, j)),   # w1 column block
            pl.BlockSpec((1, TN), lambda i, j: (0, j)),   # b1 column block
            pl.BlockSpec((H, TN), lambda i, j: (0, j)),   # w2 column block
            pl.BlockSpec((1, TN), lambda i, j: (0, j)),   # b2 column block
        ],
        out_specs=(
            pl.BlockSpec((TM, TN), lambda i, j: (i, j)),
            pl.BlockSpec((TM, TN), lambda i, j: (i, j)),
        ),
        out_shape=(
            jax.ShapeDtypeStruct((M, H), out_dt),
            jax.ShapeDtypeStruct((M, H), out_dt),
        ),
        scratch_shapes=[pltpu.VMEM((TM, H), w1t.dtype)],  # SiLU(x) cache
        compiler_params=pltpu.CompilerParams(
            # Rows are megacore-parallel; j reuses the SiLU scratch -> keep it
            # sequential ("arbitrary").
            dimension_semantics=("parallel", "arbitrary"),
            vmem_limit_bytes=vmem_limit),
        cost_estimate=cost,
    )(x2, w1t, b1r, w2t, b2r)

    return y1.reshape(orig_shape), y2.reshape(orig_shape)


# --------------------------------------------------------------------------- #
# Deterministic init mimicking torch nn.Linear (uniform +/- 1/sqrt(H))
# --------------------------------------------------------------------------- #
def init_params(key, H, dtype=jnp.float32):
    k1, k2, k3, k4 = jax.random.split(key, 4)
    bound = 1.0 / math.sqrt(H)
    w1 = jax.random.uniform(k1, (H, H), dtype, minval=-bound, maxval=bound)
    b1 = jax.random.uniform(k2, (H,), dtype, minval=-bound, maxval=bound)
    w2 = jax.random.uniform(k3, (H, H), dtype, minval=-bound, maxval=bound)
    b2 = jax.random.uniform(k4, (H,), dtype, minval=-bound, maxval=bound)
    return w1, b1, w2, b2


if __name__ == "__main__":
    B, S, H = 2, 8, 32
    key = jax.random.PRNGKey(0)
    kx, kp = jax.random.split(key)
    x = jax.random.normal(kx, (B, S, H), dtype=jnp.float32)
    w1, b1, w2, b2 = init_params(kp, H)

    # One-time parameter prep (transpose + reshape), kept out of the hot path.
    params = prepare_params(w1, b1, w2, b2)

    y1, y2 = adaptive_layer_forward(x, *params)
    jax.block_until_ready((y1, y2))

    # Pure-JAX reference (torch semantics: silu(x) @ W.T + b), f32-exact matmul.
    a = x * jax.nn.sigmoid(x)
    a2 = a.reshape(-1, H)
    y1_ref = (jnp.dot(a2, w1.T, precision=jax.lax.Precision.HIGHEST)
              + b1).reshape(x.shape)
    y2_ref = (jnp.dot(a2, w2.T, precision=jax.lax.Precision.HIGHEST)
              + b2).reshape(x.shape)

    assert y1.shape == x.shape and y2.shape == x.shape
    assert jnp.allclose(y1, y1_ref, atol=1e-4, rtol=1e-4)
    assert jnp.allclose(y2, y2_ref, atol=1e-4, rtol=1e-4)

    print("KERNEL_OK")
</pallas_src>

<mosaic_0001>
module attributes {stable_mosaic.version = 11 : i64} {
  func.func @_adaptive_layer_kernel(%arg0: i32, %arg1: i32, %arg2: memref<8x32xf32, #tpu.memory_space<vmem>>, %arg3: memref<32x32xf32, #tpu.memory_space<vmem>>, %arg4: memref<1x32xf32, #tpu.memory_space<vmem>>, %arg5: memref<32x32xf32, #tpu.memory_space<vmem>>, %arg6: memref<1x32xf32, #tpu.memory_space<vmem>>, %arg7: memref<8x32xf32, #tpu.memory_space<vmem>>, %arg8: memref<8x32xf32, #tpu.memory_space<vmem>>, %arg9: memref<8x32xf32, #tpu.memory_space<vmem>>) attributes {dimension_semantics = [#tpu.dimension_semantics<parallel>, #tpu.dimension_semantics<arbitrary>], iteration_bounds = array<i64: 2, 1>, scalar_prefetch = 0 : i64, scratch_operands = 1 : i64, tpu.core_type = #tpu.core_type<tc>, window_params = [{transform_indices = @transform_0, window_bounds = array<i64: 8, 32>}, {transform_indices = @transform_1, window_bounds = array<i64: 32, 32>}, {transform_indices = @transform_2, window_bounds = array<i64: 1, 32>}, {transform_indices = @transform_3, window_bounds = array<i64: 32, 32>}, {transform_indices = @transform_4, window_bounds = array<i64: 1, 32>}, {transform_indices = @transform_5, window_bounds = array<i64: 8, 32>}, {transform_indices = @transform_6, window_bounds = array<i64: 8, 32>}]} {
    %c0_i32 = arith.constant 0 : i32
    %0 = arith.cmpi eq, %arg1, %c0_i32 : i32
    %1 = arith.extui %0 : i1 to i32
    %c0_i32_0 = arith.constant 0 : i32
    %2 = arith.cmpi ne, %1, %c0_i32_0 : i32
    scf.if %2 {
      %c0_15 = arith.constant 0 : index
      %c0_16 = arith.constant 0 : index
      %16 = vector.load %arg2[%c0_15, %c0_16] : memref<8x32xf32, #tpu.memory_space<vmem>>, vector<8x32xf32>
      %17 = arith.negf %16 : vector<8x32xf32>
      %18 = math.exp %17 : vector<8x32xf32>
      %cst_17 = arith.constant 1.000000e+00 : f32
      %19 = vector.broadcast %cst_17 : f32 to vector<8x32xf32>
      %20 = arith.addf %19, %18 : vector<8x32xf32>
      %21 = arith.divf %19, %20 : vector<8x32xf32>
      %22 = arith.mulf %16, %21 : vector<8x32xf32>
      %c0_18 = arith.constant 0 : index
      %c0_19 = arith.constant 0 : index
      %23 = vector.load %arg9[%c0_18, %c0_19] : memref<8x32xf32, #tpu.memory_space<vmem>>, vector<8x32xf32>
      tpu.vector_store %arg9[%c0_18, %c0_19], %22 {strides = array<i32>} : memref<8x32xf32, #tpu.memory_space<vmem>>, vector<8x32xf32>,
    } else {
    }
    %c0 = arith.constant 0 : index
    %c0_1 = arith.constant 0 : index
    %3 = vector.load %arg9[%c0, %c0_1] : memref<8x32xf32, #tpu.memory_space<vmem>>, vector<8x32xf32>
    %c0_2 = arith.constant 0 : index
    %c0_3 = arith.constant 0 : index
    %4 = vector.load %arg3[%c0_2, %c0_3] : memref<32x32xf32, #tpu.memory_space<vmem>>, vector<32x32xf32>
    %cst = arith.constant dense<0.000000e+00> : vector<8x32xf32>
    %5 = tpu.matmul %3, %4, %cst {dimension_numbers = #tpu.dot_dimension_numbers<[1], [0], [0], [1], [0, 0, 1, 1], [], []>} : vector<8x32xf32>, vector<32x32xf32>, vector<8x32xf32> -> vector<8x32xf32>
    %c0_4 = arith.constant 0 : index
    %c0_5 = arith.constant 0 : index
    %6 = vector.load %arg5[%c0_4, %c0_5] : memref<32x32xf32, #tpu.memory_space<vmem>>, vector<32x32xf32>
    %cst_6 = arith.constant dense<0.000000e+00> : vector<8x32xf32>
    %7 = tpu.matmul %3, %6, %cst_6 {dimension_numbers = #tpu.dot_dimension_numbers<[1], [0], [0], [1], [0, 0, 1, 1], [], []>} : vector<8x32xf32>, vector<32x32xf32>, vector<8x32xf32> -> vector<8x32xf32>
    %c0_7 = arith.constant 0 : index
    %c0_8 = arith.constant 0 : index
    %8 = vector.load %arg4[%c0_7, %c0_8] : memref<1x32xf32, #tpu.memory_space<vmem>>, vector<1x32xf32>
    %9 = vector.broadcast %8 : vector<1x32xf32> to vector<8x32xf32>
    %10 = arith.addf %5, %9 : vector<8x32xf32>
    %c0_9 = arith.constant 0 : index
    %c0_10 = arith.constant 0 : index
    %11 = vector.load %arg7[%c0_9, %c0_10] : memref<8x32xf32, #tpu.memory_space<vmem>>, vector<8x32xf32>
    tpu.vector_store %arg7[%c0_9, %c0_10], %10 {strides = array<i32>} : memref<8x32xf32, #tpu.memory_space<vmem>>, vector<8x32xf32>,
    %c0_11 = arith.constant 0 : index
    %c0_12 = arith.constant 0 : index
    %12 = vector.load %arg6[%c0_11, %c0_12] : memref<1x32xf32, #tpu.memory_space<vmem>>, vector<1x32xf32>
    %13 = vector.broadcast %12 : vector<1x32xf32> to vector<8x32xf32>
    %14 = arith.addf %7, %13 : vector<8x32xf32>
    %c0_13 = arith.constant 0 : index
    %c0_14 = arith.constant 0 : index
    %15 = vector.load %arg8[%c0_13, %c0_14] : memref<8x32xf32, #tpu.memory_space<vmem>>, vector<8x32xf32>
    tpu.vector_store %arg8[%c0_13, %c0_14], %14 {strides = array<i32>} : memref<8x32xf32, #tpu.memory_space<vmem>>, vector<8x32xf32>,
    return
  }
  func.func @transform_0(%arg0: i32, %arg1: i32) -> (i32, i32) {
    %c0_i32 = arith.constant 0 : i32
    %c0_i32_0 = arith.constant 0 : i32
    return %arg0, %c0_i32 : i32, i32
  }
  func.func @transform_1(%arg0: i32, %arg1: i32) -> (i32, i32) {
    %c0_i32 = arith.constant 0 : i32
    %c0_i32_0 = arith.constant 0 : i32
    return %c0_i32, %arg1 : i32, i32
  }
  func.func @transform_2(%arg0: i32, %arg1: i32) -> (i32, i32) {
    %c0_i32 = arith.constant 0 : i32
    %c0_i32_0 = arith.constant 0 : i32
    return %c0_i32, %arg1 : i32, i32
  }
  func.func @transform_3(%arg0: i32, %arg1: i32) -> (i32, i32) {
    %c0_i32 = arith.constant 0 : i32
    %c0_i32_0 = arith.constant 0 : i32
    return %c0_i32, %arg1 : i32, i32
  }
  func.func @transform_4(%arg0: i32, %arg1: i32) -> (i32, i32) {
    %c0_i32 = arith.constant 0 : i32
    %c0_i32_0 = arith.constant 0 : i32
    return %c0_i32, %arg1 : i32, i32
  }
  func.func @transform_5(%arg0: i32, %arg1: i32) -> (i32, i32) {
    %c0_i32 = arith.constant 0 : i32
    return %arg0, %arg1 : i32, i32
  }
  func.func @transform_6(%arg0: i32, %arg1: i32) -> (i32, i32) {
    %c0_i32 = arith.constant 0 : i32
    return %arg0, %arg1 : i32, i32
  }
}

</mosaic_0001>

<bundles_post_ra>
// kernel: tpu_custom_call.1
= control target key start
LH: loop header
LB: loop body
LE: loop exit
PB: predicated region body
PF: predicated region fallthrough
CT: control target
= control target key end

     0   :  { %s1366_s0 = inlined_call_operand.hbm [shape: f32[16,32], index: 0, kind: input, shape index: {}]   ;;  %s1367_s1 = inlined_call_operand.hbm [shape: f32[32,32], index: 1, kind: input, shape index: {}]   ;;  %s1368_s2 = inlined_call_operand.vmem [shape: f32[1,32], index: 2, kind: input, shape index: {}]   ;;  %s1369_s3 = inlined_call_operand.hbm [shape: f32[32,32], index: 3, kind: input, shape index: {}]   ;;  %s1370_s4 = inlined_call_operand.vmem [shape: f32[1,32], index: 4, kind: input, shape index: {}]   ;;  %s1371_s5 = inlined_call_operand.hbm [shape: f32[16,32], index: 5, kind: output, shape index: {0}]   ;;  %s1372_s6 = inlined_call_operand.hbm [shape: f32[16,32], index: 6, kind: output, shape index: {1}]  }
   0x1   :  { %1376 = sst [smem:[#allocation16_spill]] %s1367_s1 }
   0x2   :  { %1377 = sst [smem:[#allocation17_spill]] %s1369_s3 }
   0x3   :  { %12 = vsyncpa [#allocation4], 0 }
   0x4   :  { %14 = vsyncpa [#allocation4 + $0x1], 0 }
   0x5   :  { %15 = vsyncpa [#allocation7], 0 }
   0x6   :  { %16 = vsyncpa [#allocation5], 0 }
   0x7   :  { %18 = vsyncpa [#allocation5 + $0x1], 0 }
   0x8   :  { %19 = vsyncpa [#allocation11], 0 }
   0x9   :  { %21 = vsyncpa [#allocation11 + $0x1], 0  ;;  %s1136_s21 = smov 0   ;;  %s1138_s22 = smov 0  }
   0xa   :  { %s1140_s23 = smov 0   ;;  %s1142_s24 = smov 0  }
   0xb   :  { %s1144_s25 = smov 0   ;;  %s1146_s26 = smov 0  }
   0xc LB: > { %s741_s27 = sadd.s32 4294967295, %s1090_s26   ;;  %s742_s28 = sadd.s32 4294967294, %s1090_s26   ;;  %s1090_s26 = sphi %s1146_s26, %s27_s26   ;;  %s1086_s25 = sphi %s1144_s25, %s1396_s25   ;;  %s1082_s24 = sphi %s1142_s24, %s1395_s24   ;;  %s1078_s23 = sphi %s1140_s23, %s1394_s23   ;;  %s1074_s22 = sphi %s1138_s22, %s1393_s22   ;;  %s1070_s21 = sphi %s1136_s21, %s1392_s21  }
   0xd   : > { %p59_p0 = scmp.ne.s32.totalorder %s1074_s22, %s1070_s21  ;;  %p1170_p1 = scmp.eq.s32.totalorder %s741_s27, 0 }
   0xe   : > { %p1174_p2 = scmp.eq.s32.totalorder %s741_s27, 1  ;;  %p195_p3 = scmp.eq.s32.totalorder %s742_s28, 1 }
   0xf   : > { %s1378_s29 = scalar_select %p1170_p1, 1, 0 }
  0x10   : > { %p1180_p4 = por %p1170_p1, %p59_p0  ;;  %p743_p5 = scmp.ge.s32.totalorder %s1090_s26, 1 }
  0x11   : > { %p1185_p6 = por %p195_p3, %p59_p0  ;;  %p230_p7 = scmp.lt.s32.totalorder %s1090_s26, 3 }
  0x12   : > { %s1380_s7 = scalar_select %p1180_p4, 1, 0 }
  0x13   : > { %s1381_s8 = scalar_select %p1185_p6, 1, 0 }
  0x14   : > { %p1190_p8 = pnand %p743_p5, %p230_p7  ;;  %s1092_s10 = smov [#allocation6]  }
  0x15   : > { %s244_s11 = sshll.u32 %s1092_s10, 4  ;;  %s1093_s13 = smov [#allocation8]   ;;  %s245_s11 = int_to_ptr.vmem [resolvable:$true] %s244_s11 }
  0x16   : > { %p814_p9 = pneg %p1190_p8  ;;  %s265_s14 = sshll.u32 %s1093_s13, 4  ;;  %s266_s14 = int_to_ptr.vmem [resolvable:$true] %s265_s14 }
  0x17   : > { %s907_s15 = scalar_lea.vmem %s245_s11, 512  ;;  %p915_p5 = scmp.lt.s32.totalorder %s245_s11, %s245_s11 }
  0x18   : > { %p1199_p11 = pnand %p814_p9, %p1170_p1  ;;  %p908_p13 = scmp.ne.s32.totalorder %s245_s11, %s907_s15 }
  0x19   : > { %p916_p7 = scmp.lt.s32.totalorder %s907_s15, %s907_s15 }
  0x1a   : > { %p898_p12 = pneg %p1199_p11 }
  0x1b   : > { %p917_p10 = por %p916_p7, %p915_p5 }
  0x1c   : > { %p910_p0 = pnand %p908_p13, %p898_p12 }
  0x1e   : > { %p911_p3 = pneg %p910_p0 }
  0x20   : > { %p918_p9 = pnand %p917_p10, %p911_p3 }
  0x22   : > { %921 = shalt.err (!%p918_p9)
}
  0x23   : > { %s1094_s16 = smov 128   ;;  %s1095_s17 = smov 8  }
  0x24   : > { %s1384_s1 = sld [smem:[#allocation16_spill]]  ;;  %s933_s20 = scalar_lea.vmem %s266_s14, 512 }
  0x25   : > { %p934_p6 = scmp.ne.s32.totalorder %s266_s14, %s933_s20  ;;  %p941_p1 = scmp.lt.s32.totalorder %s266_s14, %s266_s14 }
  0x26   : > { %p942_p4 = scmp.lt.s32.totalorder %s933_s20, %s933_s20 }
  0x27   : > { %p936_p13 = pnand %p934_p6, %p898_p12 }
  0x28   : > { %p943_p5 = por %p942_p4, %p941_p1 }
  0x29   : > { %p937_p0 = pneg %p936_p13 }
  0x2a   : > { %817 = dma.hbm_to_vmem [thread:$0]  (!%p1199_p11), %s1384_s1, 512, %s245_s11, [#allocation7], %s1094_s16, %s1094_s16, %s1095_s17  }
  0x2b   : > { %p944_p10 = pnand %p943_p5, %p937_p0 }
  0x2d   : > { %947 = shalt.err (!%p944_p10)
}
  0x2e   : > { %s1385_s3 = sld [smem:[#allocation17_spill]]  ;;  %s39_s10 = sadd.s32 1, %s1086_s25 }
  0x2f   : > { %s46_s11 = sadd.s32 1, %s1078_s23  ;;  %p41_p1 = scmp.ge.s32.totalorder %s39_s10, 2 }
  0x30   : > { %p53_p4 = scmp.ne.s32.totalorder %s1078_s23, %s1074_s22  ;;  %p54_p6 = scmp.eq.s32.totalorder %s1090_s26, 0 }
  0x31   : > { %p834_p12 = scmp.lt.s32.totalorder %s1090_s26, 2  ;;  %s1398_s10 = smov (%p41_p1, %s39_s10), 0 }
  0x32   : > { %p55_p3 = por %p54_p6, %p53_p4  ;;  %p1231_p7 = por %p1174_p2, %p53_p4 }
  0x33   : > { %s43_s13 = ssub.s32 %s1086_s25, %s1398_s10  ;;  %s285_s15 = sand.u32 1, %s1078_s23  }
  0x34   : > { %820 = dma.hbm_to_vmem [thread:$0]  (!%p1199_p11), %s1385_s3, 512, %s266_s14, [#allocation7], %s1094_s16, %s1094_s16, %s1095_s17  }
  0x35   : > { %p44_p9 = scmp.eq.s32.totalorder %s43_s13, 0  ;;  %s749_s14 = sshll.u32 %s285_s15, 3 }
  0x36   : > { %s750_s16 = sshll.u32 %s1086_s25, 7  ;;  %s289_s27 = scalar_lea.vmem [#allocation3], %s749_s14 }
  0x37   : > { %s1240_s17 = scalar_select %p44_p9, %s1078_s23, %s46_s11  }
  0x38   : > { %s294_s20 = scalar_lea.hbm %s1366_s0, %s750_s16  ;;  %s296_s28 = sshll.u32 %s289_s27, 4  ;;  %s297_s28 = int_to_ptr.vmem [resolvable:$true] %s296_s28 }
  0x39   : > { %p1247_p11 = pnand %p834_p12, %p55_p3  ;;  %s286_s1 = scalar_lea.sflag [#allocation4], %s285_s15 }
  0x3a   : > { %s961_s13 = scalar_lea.vmem %s297_s28, 128  ;;  %s1096_s11 = smov [#allocation3]  }
  0x3b   : > { %p950_p2 = pneg %p1247_p11  ;;  %p962_p13 = scmp.ne.s32.totalorder %s297_s28, %s961_s13 }
  0x3c   : > { %s966_s3 = sshll.u32 %s1096_s11, 4  ;;  %s967_s3 = int_to_ptr.vmem [resolvable:$false] %s966_s3 }
  0x3d   : > { %p964_p0 = pnand %p962_p13, %p950_p2  ;;  %s968_s16 = scalar_lea.vmem %s967_s3, 256 }
  0x3e   : > { %p969_p10 = scmp.lt.s32.totalorder %s297_s28, %s967_s3  ;;  %p970_p1 = scmp.lt.s32.totalorder %s968_s16, %s961_s13 }
  0x3f   : > { %p965_p5 = pneg %p964_p0 }
  0x40   : > { %p971_p4 = por %p970_p1, %p969_p10 }
  0x42   : > { %p972_p6 = pnand %p971_p4, %p965_p5 }
  0x44   : > { %975 = shalt.err (!%p972_p6)
}
  0x45   : > { %824 = dma.hbm_to_vmem [thread:$0]  (!%p1247_p11), %s294_s20, 128, %s297_s28, %s286_s1  }
  0x46   : > { %305 = sbr.rel (%p1190_p8) target bundleno = 354 (0x162), region = 40  ;;  %s1258_s15 = sand.u32 (!%p1190_p8), 1, %s1074_s22  }
  0x47   : > { %s1261_s14 = sshll.u32 (!%p1190_p8), %s1258_s15, 3  ;;  %s308_s3 = scalar_lea.sflag (!%p1190_p8), [#allocation4], %s1258_s15 }
  0x48   : > { %s311_s18 = scalar_lea.vmem (!%p1190_p8), [#allocation3], %s1261_s14  ;;  %p1388_p12 = scmp.ne.s32.totalorder (!%p1190_p8), %s1380_s7, 0 }
  0x4b   : > { %1053 = dma.done.wait (%p1388_p12), %s308_s3, 128  }
  0x4c   : > { %1055 = vsyncadd (%p1388_p12), %s308_s3, 4294967168  ;;  %p1389_p3 = scmp.ne.s32.totalorder %s1378_s29, 0 }
  0x4e   : > { %1057 = dma.done.wait (%p1389_p3), [#allocation7], 1024  }
  0x4f   : > { %1059 = vsyncadd (%p1389_p3), [#allocation7], 4294966272  ;;  %v1097_v0 = vmov 0.0   ;;  %vm1098_vm0 = vmmov 0   ;;  %v383_v1 = vld [vmem:[#allocation6 + $0x18] sm:$0xff]  ;;  %v382_v3 = vld [vmem:[#allocation6 + $0x10] sm:$0xff] }
  0x50   : > { %778 = vmatprep.subr.mxu0 %v1097_v0  ;;  %789 = vmatprep.subr.mxu1 %v1097_v0  ;;  %v387_v2 = vld [vmem:[#allocation8 + $0x18] sm:$0xff]  ;;  %v386_v4 = vld [vmem:[#allocation8 + $0x10] sm:$0xff]  ;;  %v381_v5 = vld [vmem:[#allocation6 + $0x8] sm:$0xff]  ;;  %vm377_vm1 = vcmask 261120   ;;  %s764_s1 = sshll.u32 %s1082_s24, 7  ;;  %s351_s20 = scalar_lea.vmem [#allocation9], %s1261_s14 }
  0x51   : > { %786 = vmatprep.mubr.msk.f32.mxu0 %vm1098_vm0, %v1097_v0  ;;  %797 = vmatprep.mubr.msk.f32.mxu1 %vm1098_vm0, %v1097_v0  ;;  %v385_v6 = vld [vmem:[#allocation8 + $0x8] sm:$0xff]  ;;  %v369_v7 = vld [vmem:[%s311_s18] sm:$0xff]  ;;  %v380_v9 = vld [vmem:[#allocation6] sm:$0xff]  ;;  %s568_s27 = sshll.u32 %s351_s20, 4  ;;  %s358_s28 = scalar_lea.vmem [#allocation10], %s1261_s14  ;;  %s1290_s27 = int_to_ptr.vmem [resolvable:$true] %s568_s27 }
  0x52   : > { %779 = vmatpush3.msra.mxu0 %v383_v1  ;;  %790 = vmatpush3.msra.mxu1 %v387_v2  ;;  %v757_v8 = vmul.f32 -1.442695, %v369_v7  ;;  %v384_v10 = vld [vmem:[#allocation8] sm:$0xff]  ;;  %v758_v16 = vld [vmem:[%s1368_s2] ss:$0 sm:$0xff]  ;;  %s582_s30 = sshll.u32 %s358_s28, 4  ;;  %s1288_s24 = scalar_lea.hbm %s1371_s5, %s764_s1  ;;  %s1297_s30 = int_to_ptr.vmem [resolvable:$true] %s582_s30 }
  0x53   : > { %780 = vmatprep.subr.mxu0 %v1097_v0  ;;  %791 = vmatprep.subr.mxu1 %v1097_v0  ;;  %v760_v17 = vld [vmem:[%s1370_s4] ss:$0 sm:$0xff]  ;;  %s1295_s3 = scalar_lea.hbm %s1372_s6, %s764_s1  ;;  %s549_s18 = scalar_lea.sflag [#allocation5], %s1258_s15 }
  0x54   : > { %781 = vmatpush3.msra.mxu0 %v382_v3  ;;  %792 = vmatpush3.msra.mxu1 %v386_v4  ;;  %892 = vpow2.f32 %v757_v8  ;;  %s976_s29 = scalar_lea.vmem %s1290_s27, 128  ;;  %s1099_s7 = smov [#allocation9]  }
  0x55   : > { %782 = vmatprep.subr.mxu0 %v1097_v0  ;;  %793 = vmatprep.subr.mxu1 %v1097_v0  ;;  %p977_p8 = scmp.ne.s32.totalorder %s1290_s27, %s976_s29  ;;  %s980_s9 = sshll.u32 %s1099_s7, 4  ;;  %s981_s9 = int_to_ptr.vmem [resolvable:$false] %s980_s9 }
  0x56   : > { %783 = vmatpush3.msra.mxu0 %v381_v5  ;;  %794 = vmatpush3.msra.mxu1 %v385_v6  ;;  %s982_s19 = scalar_lea.vmem %s981_s9, 256  ;;  %p983_p2 = scmp.lt.s32.totalorder %s1290_s27, %s981_s9 }
  0x57   : > { %784 = vmatprep.subr.mxu0 %v1097_v0  ;;  %795 = vmatprep.subr.mxu1 %v1097_v0  ;;  %p978_p9 = pnand %p977_p8, %p1231_p7  ;;  %p984_p13 = scmp.lt.s32.totalorder %s982_s19, %s976_s29 }
  0x58   : > { %785 = vmatpush3.msra.mxu0 %v380_v9  ;;  %796 = vmatpush3.msra.mxu1 %v384_v10 }
  0x59   : > { %p979_p11 = pneg %p978_p9  ;;  %p985_p0 = por %p984_p13, %p983_p2 }
  0x5b   : > { %p986_p5 = pnand %p985_p0, %p979_p11 }
  0x61   : > { %v893_v11 = vpop.eup %892 }
  0x62   : > { %v373_v12 = vadd.f32 1.0, %v893_v11 }
  0x64   : > { %894 = vrcp.f32 %v373_v12 }
  0x71   : > { %v895_v13 = vpop.eup %894 }
  0x72   : > { %v376_v14 = vmul.f32 %v895_v13, %v369_v7 }
  0x74   : > { %378 = vst.msk [vmem:[#allocation2] sm:$0xff] %vm377_vm1, %v376_v14 }
  0x7b   : > { %v379_v15 = vld [vmem:[#allocation2] sm:$0xff] }
  0x7c   : > { %787 = vmatmul.mubr.msk.f32.vlgmr.msra.gmra.mxu0 %vm377_vm1, %v379_v15  ;;  %798 = vmatmul.mubr.msk.f32.vlgmr.msra.gmra.mxu1 %vm377_vm1, %v379_v15 }
 0x13c   : > { %v465_v18 = vpop.f32.mrf.mxu0  ;;  %v543_v19 = vpop.f32.mrf.mxu1 }
 0x13d   : > { %v466_v20 = vadd.f32 %v758_v16, %v465_v18  ;;  %v544_v21 = vadd.f32 %v760_v17, %v543_v19 }
 0x13e   : > { %v788_v22 = vpop.f32.mrf.mxu0  ;;  %v799_v23 = vpop.f32.mrf.mxu1 }
 0x13f   : > { %469 = vst.msk [vmem:[%s351_s20] sm:$0xff] %vm377_vm1, %v466_v20  ;;  %547 = vst.msk [vmem:[%s358_s28] sm:$0xff] %vm377_vm1, %v544_v21 }
 0x140   : > { %989 = shalt.err (!%p986_p5)
}
 0x141   : > { %s990_s1 = scalar_lea.hbm %s1288_s24, 128  ;;  %s994_s13 = scalar_lea.hbm %s1371_s5, 256 }
 0x142   : > { %p991_p10 = scmp.ne.s32.totalorder %s1288_s24, %s990_s1  ;;  %p995_p6 = scmp.lt.s32.totalorder %s1288_s24, %s1371_s5 }
 0x143   : > { %p996_p12 = scmp.lt.s32.totalorder %s994_s13, %s990_s1 }
 0x144   : > { %p992_p1 = pnand %p991_p10, %p1231_p7 }
 0x145   : > { %p997_p3 = por %p996_p12, %p995_p6 }
 0x146   : > { %p993_p4 = pneg %p992_p1 }
 0x148   : > { %p998_p8 = pnand %p997_p3, %p993_p4 }
 0x14a   : > { %1001 = shalt.err (!%p998_p8)
}
 0x14b   : > { %810 = dma.vmem_to_hbm [thread:$0]  (%p1231_p7), %s1290_s27, 128, %s1288_s24, %s549_s18  }
 0x14c   : > { %s554_s14 = scalar_lea.sflag [#allocation11], %s1258_s15  ;;  %s1002_s29 = scalar_lea.vmem %s1297_s30, 128 }
 0x14d   : > { %p1003_p9 = scmp.ne.s32.totalorder %s1297_s30, %s1002_s29  ;;  %s1100_s7 = smov [#allocation10]  }
 0x14e   : > { %s1006_s9 = sshll.u32 %s1100_s7, 4  ;;  %s1007_s9 = int_to_ptr.vmem [resolvable:$false] %s1006_s9 }
 0x14f   : > { %p1004_p11 = pnand %p1003_p9, %p1231_p7  ;;  %s1008_s19 = scalar_lea.vmem %s1007_s9, 256 }
 0x150   : > { %p1009_p13 = scmp.lt.s32.totalorder %s1297_s30, %s1007_s9  ;;  %p1010_p0 = scmp.lt.s32.totalorder %s1008_s19, %s1002_s29 }
 0x151   : > { %p1005_p2 = pneg %p1004_p11 }
 0x152   : > { %p1011_p5 = por %p1010_p0, %p1009_p13 }
 0x154   : > { %p1012_p10 = pnand %p1011_p5, %p1005_p2 }
 0x156   : > { %1015 = shalt.err (!%p1012_p10)
}
 0x157   : > { %s1016_s27 = scalar_lea.hbm %s1295_s3, 128  ;;  %s1020_s18 = scalar_lea.hbm %s1372_s6, 256 }
 0x158   : > { %p1017_p1 = scmp.ne.s32.totalorder %s1295_s3, %s1016_s27  ;;  %p1021_p12 = scmp.lt.s32.totalorder %s1295_s3, %s1372_s6 }
 0x159   : > { %p1022_p3 = scmp.lt.s32.totalorder %s1020_s18, %s1016_s27 }
 0x15a   : > { %p1018_p4 = pnand %p1017_p1, %p1231_p7 }
 0x15b   : > { %p1023_p8 = por %p1022_p3, %p1021_p12 }
 0x15c   : > { %p1019_p6 = pneg %p1018_p4 }
 0x15e   : > { %p1024_p9 = pnand %p1023_p8, %p1019_p6 }
 0x160   : > { %1027 = shalt.err (!%p1024_p9)
}
 0x161   : > { %811 = dma.vmem_to_hbm [thread:$0]  (%p1231_p7), %s1297_s30, 128, %s1295_s3, %s554_s14  }
 0x162 PF: > { %s594_s28 = sand.u32 1, %s1070_s21   ;;  %p1390_p11 = scmp.ne.s32.totalorder %s1381_s8, 0 }
 0x163   : > { %p1391_p2 = scmp.ge.s32.totalorder %s1090_s26, 2  ;;  %s595_s13 = scalar_lea.sflag [#allocation5], %s594_s28 }
 0x165   : > { %p826_p13 = pnand %p1391_p2, %p1390_p11 }
 0x167   : > { %p827_p0 = pneg %p826_p13 }
 0x169   : > { %1061 = dma.done.wait (%p827_p0), %s595_s13, 128  }
 0x16a   : > { %1063 = vsyncadd (%p827_p0), %s595_s13, 4294967168  ;;  %s604_s11 = scalar_lea.sflag [#allocation11], %s594_s28 }
 0x16b   : > { %1065 = dma.done.wait (%p827_p0), %s604_s11, 128  }
 0x16c   : > { %1067 = vsyncadd (%p827_p0), %s604_s11, 4294967168  ;;  %s27_s26 = sadd.s32 1, %s1090_s26   ;;  %s1392_s21 = smov %s1074_s22 }
 0x16d   : > { %p24_p5 = scmp.ge.s32.totalorder %s27_s26, 4   ;;  %s1393_s22 = smov %s1078_s23 }
 0x16e   : > { %s1394_s23 = smov %s1240_s17  ;;  %s1395_s24 = smov %s1086_s25 }
 0x16f   : > { %s1396_s25 = smov %s1398_s10  ;;  %26 = sbr.rel (!%p24_p5) target bundleno = 12 (0xc), region = 122 }
 0x174   :  { %609 = vsyncpa [#allocation4], 1 }
 0x175   :  { %611 = vsyncpa [#allocation4 + $0x1], 1 }
 0x176   :  { %612 = vsyncpa [#allocation7], 1 }
 0x177   :  { %613 = vsyncpa [#allocation5], 1 }
 0x178   :  { %615 = vsyncpa [#allocation5 + $0x1], 1 }
 0x179   :  { %616 = vsyncpa [#allocation11], 1 }
 0x17a   :  { %618 = vsyncpa [#allocation11 + $0x1], 1 }

</bundles_post_ra>
